<compile_context>
chip_gen: v6e
topology: v6e:2x2x1
jax: 0.10.0
libtpu: 0.0.40
codegen_flags: <defaults>
</compile_context>

<pallas_src>
import functools
import math

import jax
import jax.numpy as jnp
from jax.experimental import pallas as pl
from jax.experimental.pallas import tpu as pltpu

LANE = 128


def _round_up(x, m):
    return ((x + m - 1) // m) * m


# ---------------- shared: fused 3-layer MLP on one batch tile (MXU, bf16->f32) -------
def _forward_logits(x_ref, w1_ref, b1_ref, w2_ref, b2_ref, w3_ref, b3_ref):
    h1 = jnp.dot(x_ref[...], w1_ref[...], preferred_element_type=jnp.float32) + b1_ref[...]
    h1 = jnp.maximum(h1, 0.0)
    h2 = jnp.dot(h1.astype(jnp.bfloat16), w2_ref[...],
                 preferred_element_type=jnp.float32) + b2_ref[...]
    h2 = jnp.maximum(h2, 0.0)
    return jnp.dot(h2.astype(jnp.bfloat16), w3_ref[...],
                   preferred_element_type=jnp.float32) + b3_ref[...]     # f32 [TM, cp]


# ---------------- single-tile path: MLP + full dim-0 softmax + narrow store ----------
def _fused_mlp_softmax_kernel(x_ref, w1_ref, b1_ref, w2_ref, b2_ref, w3_ref, b3_ref,
                              o_ref, *, n_valid, n_pad, c_out):
    logits = _forward_logits(x_ref, w1_ref, b1_ref, w2_ref, b2_ref, w3_ref, b3_ref)
    if n_pad != n_valid:                                   # mask only if padding exists
        row = jax.lax.broadcasted_iota(jnp.int32, logits.shape, 0)
        logits = jnp.where(row < n_valid, logits, jnp.float32(-1e30))
    m = jnp.max(logits, axis=0, keepdims=True)
    e = jnp.exp(logits - m)
    s = jnp.sum(e, axis=0, keepdims=True)
    inv = pl.reciprocal(s, approx=True)                    # EUP vrcp
    o_ref[...] = (e * inv)[:, :c_out]                      # narrow (c_out) HBM store


# ---------------- pass 1 (tiled path): per-core online dim-0 softmax stats -----------
def _mlp_softmax_stats_kernel(x_ref, w1_ref, b1_ref, w2_ref, b2_ref, w3_ref, b3_ref,
                              m_ref, s_ref, *, tile_m, tiles_per_core, n_valid, n_pad):
    c = pl.program_id(0)            # core axis ("parallel", v7x megacore)
    t = pl.program_id(1)            # batch-tile axis ("arbitrary", sequential accum)

    logits = _forward_logits(x_ref, w1_ref, b1_ref, w2_ref, b2_ref, w3_ref, b3_ref)

    @pl.when(t == 0)
    def _():
        m_ref[0] = jnp.full(m_ref.shape[1:], -1e30, jnp.float32)
        s_ref[0] = jnp.zeros(s_ref.shape[1:], jnp.float32)

    def update(vals):
        tile_max = jnp.max(vals, axis=0, keepdims=True)                    # (1, cp)
        m_old = m_ref[0]
        m_new = jnp.maximum(m_old, tile_max)
        s_ref[0] = s_ref[0] * jnp.exp(m_old - m_new) + jnp.sum(
            jnp.exp(vals - m_new), axis=0, keepdims=True)
        m_ref[0] = m_new

    if n_pad == n_valid:
        update(logits)                             # no padded rows anywhere: no mask
    else:
        tile_start = (c * tiles_per_core + t) * tile_m
        needs_mask = tile_start + tile_m > n_valid

        @pl.when(needs_mask)                       # only the trailing tile pays for it
        def _():
            row = jax.lax.broadcasted_iota(jnp.int32, logits.shape, 0) + tile_start
            update(jnp.where(row < n_valid, logits, jnp.float32(-1e30)))

        @pl.when(jnp.logical_not(needs_mask))
        def _():
            update(logits)


# ---------------- pass 2 (tiled path): recompute logits, combine stats, normalize ----
def _mlp_softmax_normalize_kernel(x_ref, w1_ref, b1_ref, w2_ref, b2_ref, w3_ref, b3_ref,
                                  m_ref, s_ref, o_ref, *, c_out):
    logits = _forward_logits(x_ref, w1_ref, b1_ref, w2_ref, b2_ref, w3_ref, b3_ref)
    m_part = m_ref[...]                                      # (num_cores, 1, cp)
    s_part = s_ref[...]
    m = jnp.max(m_part, axis=0)                              # (1, cp) global col max
    s = jnp.sum(s_part * jnp.exp(m_part - m), axis=0)        # (1, cp) global sum-exp
    inv = pl.reciprocal(s, approx=True)                      # EUP vrcp
    probs = jnp.exp(logits - m) * inv                        # (TM, cp) f32, in VMEM
    o_ref[...] = probs[:, :c_out]                            # narrow (c_out) HBM store


def mlp_forward(x, params):
    w1, b1, w2, b2, w3, b3 = params
    n, c_in = x.shape
    hidden = w1.shape[1]
    c_out = w3.shape[1]

    hp = _round_up(hidden, LANE)   # lane-dense hidden (64 -> 128) for in-kernel layout
    cp = _round_up(c_out, LANE)    # lane-dense logit width (8 -> 128), internal only

    # Zero-pad weights to lane-dense shapes; weights in bf16 (halves DMA bytes).
    w1p = jnp.zeros((c_in, hp), jnp.bfloat16).at[:, :hidden].set(w1.astype(jnp.bfloat16))
    b1p = jnp.zeros((1, hp), jnp.float32).at[:, :hidden].set(b1.reshape(1, -1))
    w2p = jnp.zeros((hp, hp), jnp.bfloat16).at[:hidden, :hidden].set(w2.astype(jnp.bfloat16))
    b2p = jnp.zeros((1, hp), jnp.float32).at[:, :hidden].set(b2.reshape(1, -1))
    w3p = jnp.zeros((hp, cp), jnp.bfloat16).at[:hidden, :c_out].set(w3.astype(jnp.bfloat16))
    b3p = jnp.zeros((1, cp), jnp.float32).at[:, :c_out].set(b3.reshape(1, -1))

    weight_bytes = 2 * (w1p.size + w2p.size + w3p.size) + 4 * (b1p.size + b2p.size + b3p.size)
    mlp_flops_per_row = 2 * (c_in * hp + hp * hp + hp * cp)

    # Weights / biases stay VMEM-resident: block index is always (0, 0).
    weight_specs = [
        pl.BlockSpec((c_in, hp), lambda *_: (0, 0)),
        pl.BlockSpec((1, hp), lambda *_: (0, 0)),
        pl.BlockSpec((hp, hp), lambda *_: (0, 0)),
        pl.BlockSpec((1, hp), lambda *_: (0, 0)),
        pl.BlockSpec((hp, cp), lambda *_: (0, 0)),
        pl.BlockSpec((1, cp), lambda *_: (0, 0)),
    ]

    # ---------------- single-tile fused path (tiny / moderate batches) ----------------
    if n <= 1024:
        tile_m = _round_up(max(n, 8), 8)
        n_pad = tile_m
        x_pad = jnp.zeros((n_pad, c_in), jnp.bfloat16).at[:n].set(x.astype(jnp.bfloat16))

        out_pad = pl.pallas_call(
            functools.partial(_fused_mlp_softmax_kernel,
                              n_valid=n, n_pad=n_pad, c_out=c_out),
            grid=(1,),
            in_specs=[pl.BlockSpec((tile_m, c_in), lambda i: (0, 0))] + weight_specs,
            out_specs=pl.BlockSpec((tile_m, c_out), lambda i: (0, 0)),
            out_shape=jax.ShapeDtypeStruct((n_pad, c_out), jnp.float32),
            compiler_params=pltpu.CompilerParams(dimension_semantics=("arbitrary",)),
            cost_estimate=pl.CostEstimate(
                flops=n_pad * mlp_flops_per_row + 4 * n_pad * cp,
                transcendentals=n_pad * cp,
                bytes_accessed=2 * n_pad * c_in + weight_bytes + 4 * n_pad * c_out),
        )(x_pad, w1p, b1p, w2p, b2p, w3p, b3p)
        return out_pad[:n]

    # ---------------- tiled two-pass path (large batches) -----------------------------
    # Tile size: biggest of {1024, 512, 256} that wastes the least trailing padding.
    tile_m = min((1024, 512, 256), key=lambda c: (_round_up(n, c) - n, -c))
    num_tiles = (n + tile_m - 1) // tile_m
    # v7x megacore: split pass-1 stats across 2 TensorCores when tiles divide evenly
    # (per-core partial stats; no extra padded tiles are ever created for v5e/v6e).
    num_cores = 2 if num_tiles % 2 == 0 else 1
    tiles_per_core = num_tiles // num_cores
    n_pad = num_tiles * tile_m
    x_pad = jnp.zeros((n_pad, c_in), jnp.bfloat16).at[:n].set(x.astype(jnp.bfloat16))

    # Pass 1: stats only (no logits ever touch HBM).
    m_part, s_part = pl.pallas_call(
        functools.partial(_mlp_softmax_stats_kernel, tile_m=tile_m,
                          tiles_per_core=tiles_per_core, n_valid=n, n_pad=n_pad),
        grid=(num_cores, tiles_per_core),
        in_specs=[pl.BlockSpec((tile_m, c_in),
                               lambda c, t: (c * tiles_per_core + t, 0))] + weight_specs,
        out_specs=(pl.BlockSpec((1, 1, cp), lambda c, t: (c, 0, 0)),
                   pl.BlockSpec((1, 1, cp), lambda c, t: (c, 0, 0))),
        out_shape=(jax.ShapeDtypeStruct((num_cores, 1, cp), jnp.float32),
                   jax.ShapeDtypeStruct((num_cores, 1, cp), jnp.float32)),
        compiler_params=pltpu.CompilerParams(
            dimension_semantics=("parallel", "arbitrary")),
        cost_estimate=pl.CostEstimate(
            flops=n_pad * mlp_flops_per_row,
            transcendentals=n_pad * cp,
            bytes_accessed=2 * n_pad * c_in + weight_bytes + 8 * num_cores * cp),
    )(x_pad, w1p, b1p, w2p, b2p, w3p, b3p)

    # Pass 2: recompute logits per tile, combine per-core stats, normalize, narrow store.
    out_pad = pl.pallas_call(
        functools.partial(_mlp_softmax_normalize_kernel, c_out=c_out),
        grid=(num_tiles,),
        in_specs=([pl.BlockSpec((tile_m, c_in), lambda i: (i, 0))] + weight_specs +
                  [pl.BlockSpec((num_cores, 1, cp), lambda i: (0, 0, 0)),
                   pl.BlockSpec((num_cores, 1, cp), lambda i: (0, 0, 0))]),
        out_specs=pl.BlockSpec((tile_m, c_out), lambda i: (i, 0)),
        out_shape=jax.ShapeDtypeStruct((n_pad, c_out), jnp.float32),
        compiler_params=pltpu.CompilerParams(dimension_semantics=("parallel",)),
        cost_estimate=pl.CostEstimate(
            flops=n_pad * mlp_flops_per_row + 4 * n_pad * cp,
            transcendentals=n_pad * cp,
            bytes_accessed=(2 * n_pad * c_in + weight_bytes + 8 * num_cores * cp
                            + 4 * n_pad * c_out)),
    )(x_pad, w1p, b1p, w2p, b2p, w3p, b3p, m_part, s_part)

    return out_pad[:n]


def init_params(key, in_channel, out_channel, hidden=64):
    # Deterministic synthetic init (uniform, torch-style fan-in bound), f32, unpadded.
    ks = jax.random.split(key, 6)

    def lin(kw, kb, fan_in, fan_out):
        bound = 1.0 / math.sqrt(float(fan_in))
        w = jax.random.uniform(kw, (fan_in, fan_out), jnp.float32, -bound, bound)
        b = jax.random.uniform(kb, (1, fan_out), jnp.float32, -bound, bound)
        return w, b

    w1, b1 = lin(ks[0], ks[1], in_channel, hidden)
    w2, b2 = lin(ks[2], ks[3], hidden, hidden)
    w3, b3 = lin(ks[4], ks[5], hidden, out_channel)
    # TODO(synk): self.loss_weights is a parameter unused in forward(); intentionally omitted.
    return (w1, b1, w2, b2, w3, b3)


def mlp_reference(x, params):
    w1, b1, w2, b2, w3, b3 = params
    h1 = jnp.maximum(x @ w1 + b1, 0.0)
    h2 = jnp.maximum(h1 @ w2 + b2, 0.0)
    logits = h2 @ w3 + b3
    return jax.nn.softmax(logits, axis=0)


if __name__ == "__main__":
    key = jax.random.PRNGKey(0)
    k_x, k_p, k_x2 = jax.random.split(key, 3)

    batch, in_channel, out_channel = 8, 16, 8
    x = jax.random.normal(k_x, (batch, in_channel), jnp.float32)
    params = init_params(k_p, in_channel, out_channel)

    # Small batch: single fused kernel (one pallas_call).
    out = jax.block_until_ready(mlp_forward(x, params))
    assert out.shape == (batch, out_channel)
    col_sums = jnp.sum(out, axis=0)                       # softmax(dim=0) -> cols sum to 1
    assert bool(jnp.allclose(col_sums, jnp.ones_like(col_sums), atol=3e-3))
    ref = mlp_reference(x, params)                        # bf16 MXU + approx vrcp => loose tol
    assert bool(jnp.allclose(out, ref, atol=3e-2, rtol=3e-2))

    # Larger, non-multiple batch: exercises the tiled two-pass path (per-core partial
    # stats, trailing-tile masking, recompute + narrow store).
    batch2 = 2000
    x2 = jax.random.normal(k_x2, (batch2, in_channel), jnp.float32)
    out2 = jax.block_until_ready(mlp_forward(x2, params))
    assert out2.shape == (batch2, out_channel)
    col_sums2 = jnp.sum(out2, axis=0)
    assert bool(jnp.allclose(col_sums2, jnp.ones_like(col_sums2), atol=3e-3))
    ref2 = mlp_reference(x2, params)
    assert bool(jnp.allclose(out2, ref2, atol=2e-3, rtol=1e-1))

    print("KERNEL_OK")
</pallas_src>

<mosaic_0001>
module attributes {stable_mosaic.version = 11 : i64} {
  func.func @_fused_mlp_softmax_kernel(%arg0: i32, %arg1: memref<8x16xbf16, #tpu.memory_space<vmem>>, %arg2: memref<16x128xbf16, #tpu.memory_space<vmem>>, %arg3: memref<1x128xf32, #tpu.memory_space<vmem>>, %arg4: memref<128x128xbf16, #tpu.memory_space<vmem>>, %arg5: memref<1x128xf32, #tpu.memory_space<vmem>>, %arg6: memref<128x128xbf16, #tpu.memory_space<vmem>>, %arg7: memref<1x128xf32, #tpu.memory_space<vmem>>, %arg8: memref<8x8xf32, #tpu.memory_space<vmem>>) attributes {dimension_semantics = [#tpu.dimension_semantics<arbitrary>], iteration_bounds = array<i64: 1>, scalar_prefetch = 0 : i64, scratch_operands = 0 : i64, tpu.core_type = #tpu.core_type<tc>, window_params = [{pipeline_mode = #tpu.pipeline_mode<synchronous>, transform_indices = @transform_0, window_bounds = array<i64: 8, 16>}, {pipeline_mode = #tpu.pipeline_mode<synchronous>, transform_indices = @transform_1, window_bounds = array<i64: 16, 128>}, {pipeline_mode = #tpu.pipeline_mode<synchronous>, transform_indices = @transform_2, window_bounds = array<i64: 1, 128>}, {pipeline_mode = #tpu.pipeline_mode<synchronous>, transform_indices = @transform_3, window_bounds = array<i64: 128, 128>}, {pipeline_mode = #tpu.pipeline_mode<synchronous>, transform_indices = @transform_4, window_bounds = array<i64: 1, 128>}, {pipeline_mode = #tpu.pipeline_mode<synchronous>, transform_indices = @transform_5, window_bounds = array<i64: 128, 128>}, {pipeline_mode = #tpu.pipeline_mode<synchronous>, transform_indices = @transform_6, window_bounds = array<i64: 1, 128>}, {pipeline_mode = #tpu.pipeline_mode<synchronous>, transform_indices = @transform_7, window_bounds = array<i64: 8, 8>}]} {
    %c0 = arith.constant 0 : index
    %c0_0 = arith.constant 0 : index
    %0 = vector.load %arg1[%c0, %c0_0] : memref<8x16xbf16, #tpu.memory_space<vmem>>, vector<8x16xbf16>
    %c0_1 = arith.constant 0 : index
    %c0_2 = arith.constant 0 : index
    %1 = vector.load %arg2[%c0_1, %c0_2] : memref<16x128xbf16, #tpu.memory_space<vmem>>, vector<16x128xbf16>
    %cst = arith.constant dense<0.000000e+00> : vector<8x128xf32>
    %2 = tpu.matmul %0, %1, %cst {dimension_numbers = #tpu.dot_dimension_numbers<[1], [0], [0], [1], [0, 0, 1, 1], [], []>} : vector<8x16xbf16>, vector<16x128xbf16>, vector<8x128xf32> -> vector<8x128xf32>
    %c0_3 = arith.constant 0 : index
    %c0_4 = arith.constant 0 : index
    %3 = vector.load %arg3[%c0_3, %c0_4] : memref<1x128xf32, #tpu.memory_space<vmem>>, vector<1x128xf32>
    %4 = vector.broadcast %3 : vector<1x128xf32> to vector<8x128xf32>
    %5 = arith.addf %2, %4 : vector<8x128xf32>
    %cst_5 = arith.constant 0.000000e+00 : f32
    %6 = vector.broadcast %cst_5 : f32 to vector<8x128xf32>
    %7 = arith.maximumf %5, %6 : vector<8x128xf32>
    %8 = arith.truncf %7 : vector<8x128xf32> to vector<8x128xbf16>
    %c0_6 = arith.constant 0 : index
    %c0_7 = arith.constant 0 : index
    %9 = vector.load %arg4[%c0_6, %c0_7] : memref<128x128xbf16, #tpu.memory_space<vmem>>, vector<128x128xbf16>
    %cst_8 = arith.constant dense<0.000000e+00> : vector<8x128xf32>
    %10 = tpu.matmul %8, %9, %cst_8 {dimension_numbers = #tpu.dot_dimension_numbers<[1], [0], [0], [1], [0, 0, 1, 1], [], []>} : vector<8x128xbf16>, vector<128x128xbf16>, vector<8x128xf32> -> vector<8x128xf32>
    %c0_9 = arith.constant 0 : index
    %c0_10 = arith.constant 0 : index
    %11 = vector.load %arg5[%c0_9, %c0_10] : memref<1x128xf32, #tpu.memory_space<vmem>>, vector<1x128xf32>
    %12 = vector.broadcast %11 : vector<1x128xf32> to vector<8x128xf32>
    %13 = arith.addf %10, %12 : vector<8x128xf32>
    %cst_11 = arith.constant 0.000000e+00 : f32
    %14 = vector.broadcast %cst_11 : f32 to vector<8x128xf32>
    %15 = arith.maximumf %13, %14 : vector<8x128xf32>
    %16 = arith.truncf %15 : vector<8x128xf32> to vector<8x128xbf16>
    %c0_12 = arith.constant 0 : index
    %c0_13 = arith.constant 0 : index
    %17 = vector.load %arg6[%c0_12, %c0_13] : memref<128x128xbf16, #tpu.memory_space<vmem>>, vector<128x128xbf16>
    %cst_14 = arith.constant dense<0.000000e+00> : vector<8x128xf32>
    %18 = tpu.matmul %16, %17, %cst_14 {dimension_numbers = #tpu.dot_dimension_numbers<[1], [0], [0], [1], [0, 0, 1, 1], [], []>} : vector<8x128xbf16>, vector<128x128xbf16>, vector<8x128xf32> -> vector<8x128xf32>
    %c0_15 = arith.constant 0 : index
    %c0_16 = arith.constant 0 : index
    %19 = vector.load %arg7[%c0_15, %c0_16] : memref<1x128xf32, #tpu.memory_space<vmem>>, vector<1x128xf32>
    %20 = vector.broadcast %19 : vector<1x128xf32> to vector<8x128xf32>
    %21 = arith.addf %18, %20 : vector<8x128xf32>
    %cst_17 = arith.constant dense<0xFF800000> : vector<128xf32>
    %22 = vector.multi_reduction <maximumf>, %21, %cst_17 [0] : vector<8x128xf32> to vector<128xf32>
    %23 = vector.shape_cast %22 : vector<128xf32> to vector<1x128xf32>
    %24 = vector.broadcast %23 : vector<1x128xf32> to vector<8x128xf32>
    %25 = arith.subf %21, %24 : vector<8x128xf32>
    %26 = math.exp %25 : vector<8x128xf32>
    %cst_18 = arith.constant dense<0.000000e+00> : vector<128xf32>
    %27 = vector.multi_reduction <add>, %26, %cst_18 [0] : vector<8x128xf32> to vector<128xf32>
    %28 = vector.shape_cast %27 : vector<128xf32> to vector<1x128xf32>
    %29 = tpu.reciprocal %28 {approx = true} : vector<1x128xf32> -> vector<1x128xf32>
    %30 = vector.broadcast %29 : vector<1x128xf32> to vector<8x128xf32>
    %31 = arith.mulf %26, %30 : vector<8x128xf32>
    %32 = vector.extract_strided_slice %31 {offsets = [0, 0], sizes = [8, 8], strides = [1, 1]} : vector<8x128xf32> to vector<8x8xf32>
    %c0_19 = arith.constant 0 : index
    %c0_20 = arith.constant 0 : index
    %33 = vector.load %arg8[%c0_19, %c0_20] : memref<8x8xf32, #tpu.memory_space<vmem>>, vector<8x8xf32>
    tpu.vector_store %arg8[%c0_19, %c0_20], %32 {strides = array<i32>} : memref<8x8xf32, #tpu.memory_space<vmem>>, vector<8x8xf32>,
    return
  }
  func.func @transform_0(%arg0: i32) -> (i32, i32) {
    %c0_i32 = arith.constant 0 : i32
    %c0_i32_0 = arith.constant 0 : i32
    %c0_i32_1 = arith.constant 0 : i32
    return %c0_i32, %c0_i32_0 : i32, i32
  }
  func.func @transform_1(%arg0: i32) -> (i32, i32) {
    %c0_i32 = arith.constant 0 : i32
    %c0_i32_0 = arith.constant 0 : i32
    %c0_i32_1 = arith.constant 0 : i32
    return %c0_i32, %c0_i32_0 : i32, i32
  }
  func.func @transform_2(%arg0: i32) -> (i32, i32) {
    %c0_i32 = arith.constant 0 : i32
    %c0_i32_0 = arith.constant 0 : i32
    %c0_i32_1 = arith.constant 0 : i32
    return %c0_i32, %c0_i32_0 : i32, i32
  }
  func.func @transform_3(%arg0: i32) -> (i32, i32) {
    %c0_i32 = arith.constant 0 : i32
    %c0_i32_0 = arith.constant 0 : i32
    %c0_i32_1 = arith.constant 0 : i32
    return %c0_i32, %c0_i32_0 : i32, i32
  }
  func.func @transform_4(%arg0: i32) -> (i32, i32) {
    %c0_i32 = arith.constant 0 : i32
    %c0_i32_0 = arith.constant 0 : i32
    %c0_i32_1 = arith.constant 0 : i32
    return %c0_i32, %c0_i32_0 : i32, i32
  }
  func.func @transform_5(%arg0: i32) -> (i32, i32) {
    %c0_i32 = arith.constant 0 : i32
    %c0_i32_0 = arith.constant 0 : i32
    %c0_i32_1 = arith.constant 0 : i32
    return %c0_i32, %c0_i32_0 : i32, i32
  }
  func.func @transform_6(%arg0: i32) -> (i32, i32) {
    %c0_i32 = arith.constant 0 : i32
    %c0_i32_0 = arith.constant 0 : i32
    %c0_i32_1 = arith.constant 0 : i32
    return %c0_i32, %c0_i32_0 : i32, i32
  }
  func.func @transform_7(%arg0: i32) -> (i32, i32) {
    %c0_i32 = arith.constant 0 : i32
    %c0_i32_0 = arith.constant 0 : i32
    %c0_i32_1 = arith.constant 0 : i32
    return %c0_i32, %c0_i32_0 : i32, i32
  }
}

</mosaic_0001>

<bundles_post_ra>
// kernel: tpu_custom_call.1
= control target key start
LH: loop header
LB: loop body
LE: loop exit
PB: predicated region body
PF: predicated region fallthrough
CT: control target
= control target key end

     0   :  { %12 = vsyncpa [#allocation3], 0  ;;  %s730_s0 = inlined_call_operand.hbm [shape: bf16[8,16], index: 0, kind: input, shape index: {}]   ;;  %s731_s1 = inlined_call_operand.hbm [shape: bf16[16,128], index: 1, kind: input, shape index: {}]   ;;  %s732_s2 = inlined_call_operand.vmem [shape: f32[1,128], index: 2, kind: input, shape index: {}]   ;;  %s733_s3 = inlined_call_operand.hbm [shape: bf16[128,128], index: 3, kind: input, shape index: {}]   ;;  %s734_s4 = inlined_call_operand.vmem [shape: f32[1,128], index: 4, kind: input, shape index: {}]   ;;  %s735_s5 = inlined_call_operand.hbm [shape: bf16[128,128], index: 5, kind: input, shape index: {}]   ;;  %s736_s6 = inlined_call_operand.vmem [shape: f32[1,128], index: 6, kind: input, shape index: {}]   ;;  %s737_s7 = inlined_call_operand.hbm [shape: f32[8,8], index: 7, kind: output, shape index: {}]  }
   0x1   :  { %13 = vsyncpa [#allocation6], 0 }
   0x2   :  { %14 = vsyncpa [#allocation9], 0 }
   0x3   :  { %15 = vsyncpa [#allocation4], 0  ;;  %s628_s24 = smov [#allocation5]  }
   0x4   :  { %s31_s25 = sshll.u32 %s628_s24, 4  ;;  %s32_s25 = int_to_ptr.vmem [resolvable:$true] %s31_s25 }
   0x5   :  { %s528_s26 = scalar_lea.vmem %s32_s25, 128  ;;  %p533_p1 = scmp.lt.s32.totalorder %s32_s25, %s32_s25 }
   0x6   :  { %p529_p0 = scmp.ne.s32.totalorder %s32_s25, %s528_s26  ;;  %p534_p2 = scmp.lt.s32.totalorder %s528_s26, %s528_s26 }
   0x8   :  { %p535_p3 = por %p534_p2, %p533_p1 }
   0xa   :  { %p536_p4 = pnand %p535_p3, %p529_p0 }
   0xc   :  { %539 = shalt.err (!%p536_p4)
}
   0xd   :  { %s629_s27 = smov 64   ;;  %s630_s28 = smov 4  }
   0xe   :  { %37 = dma.hbm_to_vmem [thread:$0]  %s731_s1, 128, %s32_s25, [#allocation6], %s629_s27, %s629_s27, %s630_s28  }
   0xf   :  { %s631_s8 = smov [#allocation2]   ;;  %s632_s10 = smov [#allocation7]  }
  0x10   :  { %s22_s9 = sshll.u32 %s631_s8, 4  ;;  %s45_s11 = sshll.u32 %s632_s10, 4  ;;  %s23_s9 = int_to_ptr.vmem [resolvable:$true] %s22_s9  ;;  %s46_s11 = int_to_ptr.vmem [resolvable:$true] %s45_s11 }
  0x11   :  { %s548_s12 = scalar_lea.vmem %s23_s9, 64  ;;  %p553_p6 = scmp.lt.s32.totalorder %s23_s9, %s23_s9 }
  0x12   :  { %p549_p5 = scmp.ne.s32.totalorder %s23_s9, %s548_s12  ;;  %p554_p7 = scmp.lt.s32.totalorder %s548_s12, %s548_s12 }
  0x14   :  { %p555_p8 = por %p554_p7, %p553_p6 }
  0x16   :  { %p556_p9 = pnand %p555_p8, %p549_p5 }
  0x18   :  { %559 = shalt.err (!%p556_p9)
}
  0x19   :  { %25 = dma.hbm_to_vmem [thread:$0]  %s730_s0, 64, %s23_s9, [#allocation3]  }
  0x1a   :  { %s568_s15 = scalar_lea.vmem %s46_s11, 1024  ;;  %p573_p11 = scmp.lt.s32.totalorder %s46_s11, %s46_s11 }
  0x1b   :  { %p569_p10 = scmp.ne.s32.totalorder %s46_s11, %s568_s15  ;;  %p574_p12 = scmp.lt.s32.totalorder %s568_s15, %s568_s15 }
  0x1d   :  { %p575_p13 = por %p574_p12, %p573_p11 }
  0x1f   :  { %p576_p0 = pnand %p575_p13, %p569_p10 }
  0x21   :  { %579 = shalt.err (!%p576_p0)
}
  0x22   :  { %51 = dma.hbm_to_vmem [thread:$0]  %s733_s3, 1024, %s46_s11, [#allocation6], %s629_s27, %s629_s27, %s630_s28  }
  0x23   :  { %s633_s17 = smov [#allocation8]  }
  0x24   :  { %s59_s18 = sshll.u32 %s633_s17, 4  ;;  %s60_s18 = int_to_ptr.vmem [resolvable:$true] %s59_s18 }
  0x25   :  { %s588_s19 = scalar_lea.vmem %s60_s18, 1024  ;;  %p593_p2 = scmp.lt.s32.totalorder %s60_s18, %s60_s18 }
  0x26   :  { %p589_p1 = scmp.ne.s32.totalorder %s60_s18, %s588_s19  ;;  %p594_p3 = scmp.lt.s32.totalorder %s588_s19, %s588_s19 }
  0x28   :  { %p595_p4 = por %p594_p3, %p593_p2 }
  0x2a   :  { %p596_p5 = pnand %p595_p4, %p589_p1 }
  0x2c   :  { %599 = shalt.err (!%p596_p5)
}
  0x2d   :  { %65 = dma.hbm_to_vmem [thread:$0]  %s735_s5, 1024, %s60_s18, [#allocation9], %s629_s27, %s629_s27, %s630_s28  }
  0x2e   :  { %620 = dma.done.wait [#allocation3], 64  }
  0x2f   :  { %621 = vsyncadd [#allocation3], 4294967232 }
  0x30   :  { %622 = dma.done.wait [#allocation6], 1152  }
  0x31   :  { %623 = vsyncadd [#allocation6], 4294966144 }
  0x32   :  { %624 = dma.done.wait [#allocation9], 1024  }
  0x33   :  { %625 = vsyncadd [#allocation9], 4294966272  ;;  %v634_v0 = vmov 0.0   ;;  %vm635_vm0 = vmmov 0   ;;  %v499_v1 = vld [vmem:[#allocation5] sm:$0xff]   ;;  %vm97_vm1 = vcmask 130048  }
  0x34   :  { %444 = vmatprep.subr.bf16.mxu0 %v634_v0  ;;  %446 = vmatprep.mubr.msk.bf16.mxu0 %vm635_vm0, %v634_v0  ;;  %v81_v2 = vld [vmem:[#allocation2] sm:$0xf]  ;;  %v500_v3 = vld [vmem:[#allocation7 + $0x38] sm:$0xff]   ;;  %v502_v5 = vld [vmem:[#allocation7 + $0x28] sm:$0xff]   ;;  %vm384_vm2 = vcmask 64512  }
  0x35   :  { %450 = vmatprep.subr.bf16.mxu1 %v634_v0  ;;  %466 = vmatprep.mubr.msk.bf16.mxu1 %vm635_vm0, %v634_v0  ;;  %v501_v4 = vld [vmem:[#allocation7 + $0x30] sm:$0xff]   ;;  %v503_v6 = vld [vmem:[#allocation7 + $0x20] sm:$0xff]   ;;  %v504_v7 = vld [vmem:[#allocation7 + $0x18] sm:$0xff]  }
  0x36   :  { %445 = vmatpush3.bf16.msra.mxu0 %v499_v1  ;;  %451 = vmatpush3.bf16.msra.mxu1 %v500_v3  ;;  %v505_v8 = vld [vmem:[#allocation7 + $0x10] sm:$0xff]   ;;  %v506_v9 = vld [vmem:[#allocation7 + $0x8] sm:$0xff]   ;;  %v507_v10 = vld [vmem:[#allocation7] sm:$0xff]  }
  0x37   :  { %470 = vmatprep.subr.bf16.mxu0 %v634_v0  ;;  %452 = vmatprep.subr.bf16.mxu1 %v634_v0  ;;  %v508_v11 = vld [vmem:[#allocation8 + $0x38] sm:$0xff]   ;;  %v509_v12 = vld [vmem:[#allocation8 + $0x30] sm:$0xff]   ;;  %v510_v13 = vld [vmem:[#allocation8 + $0x28] sm:$0xff]  }
  0x38   :  { %v511_v14 = vld [vmem:[#allocation8 + $0x20] sm:$0xff]   ;;  %v512_v15 = vld [vmem:[#allocation8 + $0x18] sm:$0xff]   ;;  %v513_v16 = vld [vmem:[#allocation8 + $0x10] sm:$0xff]  }
  0x39   :  { %447 = vmatmul.mubr.msk.bf16.vlgmr.msra.gmra.mxu0 %vm97_vm1, %v81_v2  ;;  %v403_v17 = vld [vmem:[%s732_s2] ss:$0 sm:$0xff]  ;;  %v514_v25 = vld [vmem:[#allocation8 + $0x8] sm:$0xff]   ;;  %v515_v26 = vld [vmem:[#allocation8] sm:$0xff]  }
  0x3a   :  { %486 = vmatprep.mubr.msk.bf16.mxu0 %vm635_vm0, %v634_v0  ;;  %453 = vmatpush3.bf16.msra.mxu1 %v501_v4  ;;  %v406_v27 = vld [vmem:[%s734_s4] ss:$0 sm:$0xff]  ;;  %s636_s4 = smov [#allocation10]  }
  0x3b   :  { %454 = vmatprep.subr.bf16.mxu1 %v634_v0  ;;  %471 = vmatpush3.bf16.msra.mxu0 %v508_v11  ;;  %v415_v35 = vld [vmem:[%s736_s6] ss:$0 sm:$0xff]  ;;  %s392_s6 = sshll.u32 %s636_s4, 4  ;;  %s393_s6 = int_to_ptr.vmem [resolvable:$true] %s392_s6 }
  0x3c   :  { %472 = vmatprep.subr.bf16.mxu0 %v634_v0  ;;  %s600_s24 = scalar_lea.vmem %s393_s6, 128  ;;  %p605_p7 = scmp.lt.s32.totalorder %s393_s6, %s393_s6 }
  0x3d   :  { %p601_p6 = scmp.ne.s32.totalorder %s393_s6, %s600_s24  ;;  %p606_p8 = scmp.lt.s32.totalorder %s600_s24, %s600_s24 }
  0x3e   :  { %455 = vmatpush3.bf16.msra.mxu1 %v502_v5 }
  0x3f   :  { %456 = vmatprep.subr.bf16.mxu1 %v634_v0  ;;  %473 = vmatpush3.bf16.msra.mxu0 %v509_v12  ;;  %p607_p9 = por %p606_p8, %p605_p7 }
  0x40   :  { %474 = vmatprep.subr.bf16.mxu0 %v634_v0 }
  0x41   :  { %p608_p10 = pnand %p607_p9, %p601_p6 }
  0x42   :  { %457 = vmatpush3.bf16.msra.mxu1 %v503_v6 }
  0x43   :  { %458 = vmatprep.subr.bf16.mxu1 %v634_v0  ;;  %475 = vmatpush3.bf16.msra.mxu0 %v510_v13 }
  0x44   :  { %476 = vmatprep.subr.bf16.mxu0 %v634_v0 }
  0x46   :  { %459 = vmatpush3.bf16.msra.mxu1 %v504_v7 }
  0x47   :  { %460 = vmatprep.subr.bf16.mxu1 %v634_v0  ;;  %477 = vmatpush3.bf16.msra.mxu0 %v511_v14 }
  0x48   :  { %478 = vmatprep.subr.bf16.mxu0 %v634_v0 }
  0x4a   :  { %461 = vmatpush3.bf16.msra.mxu1 %v505_v8 }
  0x4b   :  { %462 = vmatprep.subr.bf16.mxu1 %v634_v0  ;;  %479 = vmatpush3.bf16.msra.mxu0 %v512_v15 }
  0x4c   :  { %480 = vmatprep.subr.bf16.mxu0 %v634_v0 }
  0x4e   :  { %463 = vmatpush3.bf16.msra.mxu1 %v506_v9 }
  0x4f   :  { %464 = vmatprep.subr.bf16.mxu1 %v634_v0  ;;  %481 = vmatpush3.bf16.msra.mxu0 %v513_v16 }
  0x50   :  { %482 = vmatprep.subr.bf16.mxu0 %v634_v0 }
  0x52   :  { %465 = vmatpush3.bf16.msra.mxu1 %v507_v10 }
  0x53   :  { %483 = vmatpush3.bf16.msra.mxu0 %v514_v25 }
  0x54   :  { %484 = vmatprep.subr.bf16.mxu0 %v634_v0 }
  0x57   :  { %485 = vmatpush3.bf16.msra.mxu0 %v515_v26 }
  0xf9   :  { %v135_v18 = vpop.f32.mrf.mxu0 }
  0xfa   :  { %v136_v19 = vadd.f32 %v403_v17, %v135_v18 }
  0xfb   :  { %v448_v20 = vpop.f32.mrf.mxu0 }
  0xfc   :  { %v141_v21 = vmax.f32 %v136_v19, 0.0 }
  0xfd   :  { %v138_v22 = vpop.f32.mrf.mxu0 }
  0xfe   :  { %v142_v23 = vpack.c.bf16 %v141_v21, %v141_v21 }
  0xff   :  { %v449_v24 = vpop.f32.mrf.mxu0 }
 0x100   :  { %467 = vmatmul.mubr.bf16.vlgmr.msra.gmra.mxu1 %v142_v23 }
 0x1c0   :  { %v248_v28 = vpop.f32.mrf.mxu1 }
 0x1c1   :  { %v249_v29 = vadd.f32 %v406_v27, %v248_v28 }
 0x1c2   :  { %v468_v30 = vpop.f32.mrf.mxu1 }
 0x1c3   :  { %v254_v31 = vmax.f32 %v249_v29, 0.0 }
 0x1c4   :  { %v251_v32 = vpop.f32.mrf.mxu1 }
 0x1c5   :  { %v255_v33 = vpack.c.bf16 %v254_v31, %v254_v31 }
 0x1c6   :  { %v469_v34 = vpop.f32.mrf.mxu1 }
 0x1c7   :  { %487 = vmatmul.mubr.bf16.vlgmr.msra.gmra.mxu0 %v255_v33 }
 0x287   :  { %v361_v36 = vpop.f32.mrf.mxu0 }
 0x288   :  { %v362_v37 = vadd.f32 %v415_v35, %v361_v36 }
 0x289   :  { %v488_v38 = vpop.f32.mrf.mxu0 }
 0x28a   :  { %v367_v39 = vrot.slane %v362_v37, 4 }
 0x28b   :  { %v364_v40 = vpop.f32.mrf.mxu0 }
 0x28c   :  { %v368_v41 = vmax.f32 %v362_v37, %v367_v39 }
 0x28d   :  { %v489_v42 = vpop.f32.mrf.mxu0 }
 0x28e   :  { %v369_v43 = vrot.slane %v368_v41, 2 }
 0x290   :  { %v370_v44 = vmax.f32 %v368_v41, %v369_v43 }
 0x292   :  { %v371_v45 = vrot.slane %v370_v44, 1 }
 0x294   :  { %v372_v46 = vmax.f32 %v370_v44, %v371_v45 }
 0x296   :  { %v373_v47 = vsub.f32 %v362_v37, %v372_v46 }
 0x298   :  { %v374_v48 = vmul.f32 1.442695, %v373_v47 }
 0x29a   :  { %516 = vpow2.f32 %v374_v48 }
 0x2a7   :  { %v517_v49 = vpop.eup %516 }
 0x2a8   :  { %v376_v50 = vrot.slane %v517_v49, 4 }
 0x2aa   :  { %v377_v51 = vadd.f32 %v517_v49, %v376_v50 }
 0x2ac   :  { %v378_v52 = vrot.slane %v377_v51, 2 }
 0x2ae   :  { %v379_v53 = vadd.f32 %v378_v52, %v377_v51 }
 0x2b0   :  { %v380_v54 = vrot.slane %v379_v53, 1 }
 0x2b2   :  { %v381_v55 = vadd.f32 %v380_v54, %v379_v53 }
 0x2b4   :  { %518 = vrcp.f32 %v381_v55 }
 0x2c1   :  { %v519_v56 = vpop.eup %518 }
 0x2c2   :  { %v383_v57 = vmul.f32 %v519_v56, %v517_v49 }
 0x2c4   :  { %385 = vst.msk [vmem:[#allocation10] sm:$0xff] %vm384_vm2, %v383_v57 }
 0x2c5   :  { %611 = shalt.err (!%p608_p10)
}
 0x2c6   :  { %395 = dma.vmem_to_hbm [thread:$0]  %s393_s6, 128, %s737_s7, [#allocation4]  }
 0x2c7   :  { %626 = dma.done.wait [#allocation4], 128  }
 0x2c8   :  { %627 = vsyncadd [#allocation4], 4294967168 }
 0x2c9   :  { %399 = vsyncpa [#allocation3], 1 }
 0x2ca   :  { %400 = vsyncpa [#allocation6], 1 }
 0x2cb   :  { %401 = vsyncpa [#allocation9], 1 }
 0x2cc   :  { %402 = vsyncpa [#allocation4], 1 }

</bundles_post_ra>
